<compile_context>
chip_gen: v6e
topology: v6e:2x2x1
jax: 0.10.0
libtpu: 0.0.40
codegen_flags: <defaults>
</compile_context>

<pallas_src>
import functools

import jax
import jax.numpy as jnp
from jax import lax
from jax.experimental import pallas as pl
from jax.experimental.pallas import tpu as pltpu

BLOCK_SIZE = 32   # max sequence length (causal-mask buffer size in PyTorch)
N_EMBED = 64      # n_embed
HEAD_SIZE = 16    # head_size chosen for this synthetic example
DROPOUT = 0.0     # dropout=0.0 -> identity


def _head_kernel(x_ref, wq_ref, wk_ref, wv_ref, o_ref, *, T, scale):
    """x_ref: (B*T, C) f32.  w*_ref: (C, H) f32.  o_ref: (B*T, H) f32.

    Single block-diagonal attention over the flattened (B*T) axis.
    """
    N = x_ref.shape[0]   # B*T

    # bf16 MXU operands, f32 accumulation.  Elementwise math stays f32.
    x = x_ref[...].astype(jnp.bfloat16)                               # (N, C)
    wq = wq_ref[...].astype(jnp.bfloat16)                             # (C, H)
    wk = wk_ref[...].astype(jnp.bfloat16)
    wv = wv_ref[...].astype(jnp.bfloat16)

    q = jnp.dot(x, wq, preferred_element_type=jnp.float32)            # (N, H) f32
    k = jnp.dot(x, wk, preferred_element_type=jnp.float32)
    v = jnp.dot(x, wv, preferred_element_type=jnp.float32)

    # Scores: one (N, N) matmul contracting the head dim (no explicit transpose),
    # scaled by C ** -0.5 to match the PyTorch module.
    s = lax.dot_general(
        q.astype(jnp.bfloat16), k.astype(jnp.bfloat16),
        dimension_numbers=(((1,), (1,)), ((), ())),
        preferred_element_type=jnp.float32) * jnp.float32(scale)      # (N, N)

    # Block-diagonal causal mask: same batch (row//T == col//T) AND col%T <= row%T.
    row = lax.broadcasted_iota(jnp.int32, (N, N), 0)
    col = lax.broadcasted_iota(jnp.int32, (N, N), 1)
    if T & (T - 1) == 0:                 # T is a power of two -> shifts/ands
        shift = T.bit_length() - 1
        same_batch = (row >> shift) == (col >> shift)
        causal = (col & (T - 1)) <= (row & (T - 1))
    else:
        same_batch = (row // T) == (col // T)
        causal = (col % T) <= (row % T)
    s = jnp.where(same_batch & causal, s, -jnp.inf)

    # Numerically-stable softmax in f32; exact divide (free at this size).
    m = jnp.max(s, axis=-1, keepdims=True)
    e = jnp.exp(s - m)
    denom = jnp.sum(e, axis=-1, keepdims=True)
    p = e / denom

    # dropout p = 0.0 -> identity.

    out = jnp.dot(p.astype(jnp.bfloat16), v.astype(jnp.bfloat16),
                  preferred_element_type=jnp.float32)                 # (N, H)
    o_ref[...] = out.astype(o_ref.dtype)


def head_forward(x, w_key, w_query, w_value):
    """x: (B, T, C) f32; w_*: (H, C) PyTorch-style Linear weights (no bias)."""
    B, T, C = x.shape
    H = w_key.shape[0]
    scale = float(C) ** -0.5

    # Pre-transpose the projection weights to (C, H); flatten batch into rows.
    wq = jnp.asarray(w_query.T)
    wk = jnp.asarray(w_key.T)
    wv = jnp.asarray(w_value.T)
    x2d = x.reshape(B * T, C)

    kernel = functools.partial(_head_kernel, T=T, scale=scale)

    vmem = lambda: pl.BlockSpec(memory_space=pltpu.MemorySpace.VMEM)
    out2d = pl.pallas_call(
        kernel,
        out_shape=jax.ShapeDtypeStruct((B * T, H), x.dtype),
        in_specs=[vmem(), vmem(), vmem(), vmem()],
        out_specs=vmem(),
    )(x2d, wq, wk, wv)

    # Zero-cost leading-dim split back to (B, T, H).
    return out2d.reshape(B, T, H)

    # TODO(synk): when B*T / n_heads grow, add a "parallel" grid axis (v7x 2-TC
    # split) and fuse all heads into one weight so the MXU tile and output
    # lanes are actually filled; at this toy size a single grid-less call wins.


def head_reference(x, w_key, w_query, w_value):
    """Pure-JAX f32 reference mirroring the PyTorch forward, for verification."""
    B, T, C = x.shape
    k = x @ w_key.T
    q = x @ w_query.T
    v = x @ w_value.T
    wei = (q @ jnp.swapaxes(k, -2, -1)) * (C ** -0.5)
    mask = jnp.tril(jnp.ones((T, T), dtype=bool))
    wei = jnp.where(mask[None, :, :], wei, -jnp.inf)
    wei = jax.nn.softmax(wei, axis=-1)
    return wei @ v


if __name__ == "__main__":
    key = jax.random.PRNGKey(0)
    kx, kk, kq, kv = jax.random.split(key, 4)

    B, T, C, H = 2, 8, N_EMBED, HEAD_SIZE   # T <= block_size (32)

    x = jax.random.normal(kx, (B, T, C), dtype=jnp.float32)
    # Deterministic "Linear(no bias)" weights, PyTorch shape (head_size, n_embed).
    bound = 1.0 / (C ** 0.5)
    w_key = jax.random.uniform(kk, (H, C), jnp.float32, -bound, bound)
    w_query = jax.random.uniform(kq, (H, C), jnp.float32, -bound, bound)
    w_value = jax.random.uniform(kv, (H, C), jnp.float32, -bound, bound)

    out = head_forward(x, w_key, w_query, w_value)
    out = jax.block_until_ready(out)

    ref = head_reference(x, w_key, w_query, w_value)
    assert out.shape == (B, T, H)
    # Tolerance accounts for bf16 MXU operands (f32 accumulation) vs the f32 reference.
    assert jnp.allclose(out, ref, atol=2e-2, rtol=2e-2), "mismatch vs reference"

    print("KERNEL_OK")
</pallas_src>

<mosaic_0001>
module attributes {stable_mosaic.version = 11 : i64} {
  func.func @_head_kernel(%arg0: memref<16x64xf32, #tpu.memory_space<vmem>>, %arg1: memref<64x16xf32, #tpu.memory_space<vmem>>, %arg2: memref<64x16xf32, #tpu.memory_space<vmem>>, %arg3: memref<64x16xf32, #tpu.memory_space<vmem>>, %arg4: memref<16x16xf32, #tpu.memory_space<vmem>>) attributes {dimension_semantics = [], scalar_prefetch = 0 : i64, scratch_operands = 0 : i64, tpu.core_type = #tpu.core_type<tc>} {
    %c0 = arith.constant 0 : index
    %c0_0 = arith.constant 0 : index
    %0 = vector.load %arg0[%c0, %c0_0] : memref<16x64xf32, #tpu.memory_space<vmem>>, vector<16x64xf32>
    %1 = arith.truncf %0 : vector<16x64xf32> to vector<16x64xbf16>
    %c0_1 = arith.constant 0 : index
    %c0_2 = arith.constant 0 : index
    %2 = vector.load %arg1[%c0_1, %c0_2] : memref<64x16xf32, #tpu.memory_space<vmem>>, vector<64x16xf32>
    %3 = arith.truncf %2 : vector<64x16xf32> to vector<64x16xbf16>
    %c0_3 = arith.constant 0 : index
    %c0_4 = arith.constant 0 : index
    %4 = vector.load %arg2[%c0_3, %c0_4] : memref<64x16xf32, #tpu.memory_space<vmem>>, vector<64x16xf32>
    %5 = arith.truncf %4 : vector<64x16xf32> to vector<64x16xbf16>
    %c0_5 = arith.constant 0 : index
    %c0_6 = arith.constant 0 : index
    %6 = vector.load %arg3[%c0_5, %c0_6] : memref<64x16xf32, #tpu.memory_space<vmem>>, vector<64x16xf32>
    %7 = arith.truncf %6 : vector<64x16xf32> to vector<64x16xbf16>
    %cst = arith.constant dense<0.000000e+00> : vector<16x16xf32>
    %8 = tpu.matmul %1, %3, %cst {dimension_numbers = #tpu.dot_dimension_numbers<[1], [0], [0], [1], [0, 0, 1, 1], [], []>} : vector<16x64xbf16>, vector<64x16xbf16>, vector<16x16xf32> -> vector<16x16xf32>
    %cst_7 = arith.constant dense<0.000000e+00> : vector<16x16xf32>
    %9 = tpu.matmul %1, %5, %cst_7 {dimension_numbers = #tpu.dot_dimension_numbers<[1], [0], [0], [1], [0, 0, 1, 1], [], []>} : vector<16x64xbf16>, vector<64x16xbf16>, vector<16x16xf32> -> vector<16x16xf32>
    %cst_8 = arith.constant dense<0.000000e+00> : vector<16x16xf32>
    %10 = tpu.matmul %1, %7, %cst_8 {dimension_numbers = #tpu.dot_dimension_numbers<[1], [0], [0], [1], [0, 0, 1, 1], [], []>} : vector<16x64xbf16>, vector<64x16xbf16>, vector<16x16xf32> -> vector<16x16xf32>
    %11 = arith.truncf %8 : vector<16x16xf32> to vector<16x16xbf16>
    %12 = arith.truncf %9 : vector<16x16xf32> to vector<16x16xbf16>
    %cst_9 = arith.constant dense<0.000000e+00> : vector<16x16xf32>
    %13 = tpu.matmul %11, %12, %cst_9 {dimension_numbers = #tpu.dot_dimension_numbers<[1], [1], [0], [0], [0, 0, 1, 0], [], []>} : vector<16x16xbf16>, vector<16x16xbf16>, vector<16x16xf32> -> vector<16x16xf32>
    %cst_10 = arith.constant 1.250000e-01 : f32
    %14 = vector.broadcast %cst_10 : f32 to vector<16x16xf32>
    %15 = arith.mulf %13, %14 : vector<16x16xf32>
    %16 = tpu.iota {dimensions = array<i32: 0>} : vector<16x16xi32>
    %17 = tpu.iota {dimensions = array<i32: 1>} : vector<16x16xi32>
    %c3_i32 = arith.constant 3 : i32
    %18 = vector.broadcast %c3_i32 : i32 to vector<16x16xi32>
    %19 = arith.shrsi %16, %18 : vector<16x16xi32>
    %c3_i32_11 = arith.constant 3 : i32
    %20 = vector.broadcast %c3_i32_11 : i32 to vector<16x16xi32>
    %21 = arith.shrsi %17, %20 : vector<16x16xi32>
    %22 = arith.cmpi eq, %19, %21 : vector<16x16xi32>
    %c7_i32 = arith.constant 7 : i32
    %23 = vector.broadcast %c7_i32 : i32 to vector<16x16xi32>
    %24 = arith.andi %17, %23 : vector<16x16xi32>
    %c7_i32_12 = arith.constant 7 : i32
    %25 = vector.broadcast %c7_i32_12 : i32 to vector<16x16xi32>
    %26 = arith.andi %16, %25 : vector<16x16xi32>
    %27 = arith.cmpi sle, %24, %26 : vector<16x16xi32>
    %28 = arith.andi %22, %27 : vector<16x16xi1>
    %cst_13 = arith.constant 0xFF800000 : f32
    %29 = vector.broadcast %cst_13 : f32 to vector<16x16xf32>
    %30 = arith.select %28, %15, %29 : vector<16x16xi1>, vector<16x16xf32>
    %cst_14 = arith.constant dense<0xFF800000> : vector<16xf32>
    %31 = vector.multi_reduction <maximumf>, %30, %cst_14 [1] : vector<16x16xf32> to vector<16xf32>
    %32 = vector.shape_cast %31 : vector<16xf32> to vector<16x1xf32>
    %33 = vector.broadcast %32 : vector<16x1xf32> to vector<16x16xf32>
    %34 = arith.subf %30, %33 : vector<16x16xf32>
    %35 = math.exp %34 : vector<16x16xf32>
    %cst_15 = arith.constant dense<0.000000e+00> : vector<16xf32>
    %36 = vector.multi_reduction <add>, %35, %cst_15 [1] : vector<16x16xf32> to vector<16xf32>
    %37 = vector.shape_cast %36 : vector<16xf32> to vector<16x1xf32>
    %38 = vector.broadcast %37 : vector<16x1xf32> to vector<16x16xf32>
    %39 = arith.divf %35, %38 : vector<16x16xf32>
    %40 = arith.truncf %39 : vector<16x16xf32> to vector<16x16xbf16>
    %41 = arith.truncf %10 : vector<16x16xf32> to vector<16x16xbf16>
    %cst_16 = arith.constant dense<0.000000e+00> : vector<16x16xf32>
    %42 = tpu.matmul %40, %41, %cst_16 {dimension_numbers = #tpu.dot_dimension_numbers<[1], [0], [0], [1], [0, 0, 1, 1], [], []>} : vector<16x16xbf16>, vector<16x16xbf16>, vector<16x16xf32> -> vector<16x16xf32>
    %c0_17 = arith.constant 0 : index
    %c0_18 = arith.constant 0 : index
    %43 = vector.load %arg4[%c0_17, %c0_18] : memref<16x16xf32, #tpu.memory_space<vmem>>, vector<16x16xf32>
    tpu.vector_store %arg4[%c0_17, %c0_18], %42 {strides = array<i32>} : memref<16x16xf32, #tpu.memory_space<vmem>>, vector<16x16xf32>,
    return
  }
}

</mosaic_0001>

<bundles_post_ra>
// kernel: tpu_custom_call.1
= control target key start
LH: loop header
LB: loop body
LE: loop exit
PB: predicated region body
PF: predicated region fallthrough
CT: control target
= control target key end

     0   :  { %v449_v3 = vmov 0.0   ;;  %vm450_vm0 = vmmov 0   ;;  %s596_s0 = inlined_call_operand.vmem [shape: f32[16,64], index: 0, kind: input, shape index: {}]   ;;  %s597_s1 = inlined_call_operand.vmem [shape: f32[64,16], index: 1, kind: input, shape index: {}]   ;;  %s598_s2 = inlined_call_operand.vmem [shape: f32[64,16], index: 2, kind: input, shape index: {}]   ;;  %s599_s3 = inlined_call_operand.vmem [shape: f32[64,16], index: 3, kind: input, shape index: {}]   ;;  %s600_s4 = inlined_call_operand.hbm [shape: f32[16,16], index: 4, kind: output, shape index: {}]  }
   0x1   :  { %v40_v0 = vld [vmem:[%s598_s2 + $0x30] sm:$0xff]  ;;  %v41_v1 = vld [vmem:[%s598_s2 + $0x38] sm:$0xff]  ;;  %378 = vmatprep.subr.bf16.mxu1 %v449_v3  ;;  %366 = vmatprep.subr.bf16.mxu0 %v449_v3  ;;  %v38_v6 = vld [vmem:[%s598_s2 + $0x20] sm:$0xff] }
   0x2   :  { %v28_v2 = vld [vmem:[%s597_s1 + $0x30] sm:$0xff]  ;;  %v45_v4 = vpack.c.bf16 %v41_v1, %v40_v0  ;;  %v29_v5 = vld [vmem:[%s597_s1 + $0x38] sm:$0xff]  ;;  %v39_v7 = vld [vmem:[%s598_s2 + $0x28] sm:$0xff]  ;;  %386 = vmatprep.mubr.msk.bf16.mxu1 %vm450_vm0, %v449_v3  ;;  %374 = vmatprep.mubr.msk.bf16.mxu0 %vm450_vm0, %v449_v3 }
   0x3   :  { %v33_v8 = vpack.c.bf16 %v29_v5, %v28_v2  ;;  %v26_v9 = vld [vmem:[%s597_s1 + $0x20] sm:$0xff]  ;;  %v27_v10 = vld [vmem:[%s597_s1 + $0x28] sm:$0xff]  ;;  %v44_v11 = vpack.c.bf16 %v39_v7, %v38_v6  ;;  %v36_v13 = vld [vmem:[%s598_s2 + $0x10] sm:$0xff] }
   0x4   :  { %379 = vmatpush3.bf16.msra.mxu1 %v45_v4  ;;  %v32_v12 = vpack.c.bf16 %v27_v10, %v26_v9  ;;  %v37_v14 = vld [vmem:[%s598_s2 + $0x18] sm:$0xff]  ;;  %v24_v15 = vld [vmem:[%s597_s1 + $0x10] sm:$0xff] }
   0x5   :  { %367 = vmatpush3.bf16.msra.mxu0 %v33_v8  ;;  %380 = vmatprep.subr.bf16.mxu1 %v449_v3  ;;  %v25_v16 = vld [vmem:[%s597_s1 + $0x18] sm:$0xff] }
   0x6   :  { %368 = vmatprep.subr.bf16.mxu0 %v449_v3 }
   0x7   :  { %9 = vsyncpa [#allocation3], 0  ;;  %v43_v17 = vpack.c.bf16 %v37_v14, %v36_v13  ;;  %v31_v18 = vpack.c.bf16 %v25_v16, %v24_v15  ;;  %v34_v19 = vld [vmem:[%s598_s2] sm:$0xff]  ;;  %v35_v20 = vld [vmem:[%s598_s2 + $0x8] sm:$0xff]  ;;  %vm58_vm1 = vcmask 523264   ;;  %vm187_vm2 = vcmask 130048  }
   0x8   :  { %381 = vmatpush3.bf16.msra.mxu1 %v44_v11  ;;  %v22_v21 = vld [vmem:[%s597_s1] sm:$0xff]  ;;  %v23_v22 = vld [vmem:[%s597_s1 + $0x8] sm:$0xff]  ;;  %v42_v23 = vpack.c.bf16 %v35_v20, %v34_v19  ;;  %v52_v39 = vld [vmem:[%s599_s3 + $0x30] sm:$0xff]  ;;  %v237_v51 = vlaneseq }
   0x9   :  { %369 = vmatpush3.bf16.msra.mxu0 %v32_v12  ;;  %382 = vmatprep.subr.bf16.mxu1 %v449_v3  ;;  %v19_v24 = vld [vmem:[%s596_s0] sm:$0xff]  ;;  %v20_v25 = vld [vmem:[%s596_s0 + $0x8] sm:$0xff]  ;;  %v30_v26 = vpack.c.bf16 %v23_v22, %v22_v21  ;;  %v53_v40 = vld [vmem:[%s599_s3 + $0x38] sm:$0xff] }
   0xa   :  { %370 = vmatprep.subr.bf16.mxu0 %v449_v3  ;;  %v21_v27 = vpack.c.bf16 %v20_v25, %v19_v24  ;;  %v50_v41 = vld [vmem:[%s599_s3 + $0x20] sm:$0xff]  ;;  %v57_v42 = vpack.c.bf16 %v53_v40, %v52_v39  ;;  %v51_v43 = vld [vmem:[%s599_s3 + $0x28] sm:$0xff]  ;;  %v48_v45 = vld [vmem:[%s599_s3 + $0x10] sm:$0xff]  ;;  %v238_v52 = vshrl.u32 %v237_v51, 7  ;;  %v241_v53 = vand.u32 127, %v237_v51 }
   0xb   :  { %v56_v44 = vpack.c.bf16 %v51_v43, %v50_v41  ;;  %v49_v46 = vld [vmem:[%s599_s3 + $0x18] sm:$0xff]  ;;  %v46_v48 = vld [vmem:[%s599_s3] sm:$0xff]  ;;  %v47_v49 = vld [vmem:[%s599_s3 + $0x8] sm:$0xff]  ;;  %s451_s3 = smov [#allocation2]  }
   0xc   :  { %383 = vmatpush3.bf16.msra.mxu1 %v43_v17  ;;  %v55_v47 = vpack.c.bf16 %v49_v46, %v48_v45  ;;  %v54_v50 = vpack.c.bf16 %v47_v49, %v46_v48  ;;  %v242_v54 = vshra.s32 %v238_v52, 3  ;;  %v244_v55 = vshra.s32 %v241_v53, 3  ;;  %s331_s12 = sshll.u32 %s451_s3, 4  ;;  %s332_s12 = int_to_ptr.vmem [resolvable:$true] %s331_s12 }
   0xd   :  { %371 = vmatpush3.bf16.msra.mxu0 %v31_v18  ;;  %384 = vmatprep.subr.bf16.mxu1 %v449_v3  ;;  %v247_v56 = vand.u32 7, %v241_v53  ;;  %v248_v57 = vand.u32 7, %v238_v52  ;;  %v239_v58 = vadd.s32 8, %v238_v52  ;;  %s427_s13 = scalar_lea.vmem %s332_s12, 256  ;;  %p432_p1 = scmp.lt.s32.totalorder %s332_s12, %s332_s12 }
   0xe   :  { %372 = vmatprep.subr.bf16.mxu0 %v449_v3  ;;  %vm245_vm3 = vcmp.eq.s32.totalorder %v242_v54, %v244_v55  ;;  %p428_p0 = scmp.ne.s32.totalorder %s332_s12, %s427_s13  ;;  %p433_p2 = scmp.lt.s32.totalorder %s427_s13, %s427_s13 }
   0xf   :  { %vm250_vm4 = vcmp.le.s32.totalorder %v247_v56, %v248_v57  ;;  %v243_v59 = vshra.s32 %v239_v58, 3  ;;  %v249_v60 = vand.u32 7, %v239_v58 }
  0x10   :  { %385 = vmatpush3.bf16.msra.mxu1 %v42_v23  ;;  %vm252_vm5 = vmand %vm245_vm3, %vm250_vm4  ;;  %p434_p3 = por %p433_p2, %p432_p1 }
  0x11   :  { %373 = vmatpush3.bf16.msra.mxu0 %v30_v26  ;;  %402 = vmatprep.subr.bf16.mxu1 %v449_v3  ;;  %vm246_vm6 = vcmp.eq.s32.totalorder %v243_v59, %v244_v55  ;;  %vm251_vm7 = vcmp.le.s32.totalorder %v247_v56, %v249_v60 }
  0x12   :  { %390 = vmatprep.subr.bf16.mxu0 %v449_v3  ;;  %vm253_vm8 = vmand %vm246_vm6, %vm251_vm7  ;;  %p435_p4 = pnand %p434_p3, %p428_p0 }
  0x13   :  { %387 = vmatmul.mubr.msk.bf16.vlgmr.msra.gmra.mxu1 %vm58_vm1, %v21_v27 }
  0x14   :  { %375 = vmatmul.mubr.msk.bf16.vlgmr.msra.gmra.mxu0 %vm58_vm1, %v21_v27  ;;  %404 = vmatprep.mubr.msk.bf16.mxu1 %vm450_vm0, %v449_v3 }
  0x15   :  { %398 = vmatprep.mubr.msk.bf16.mxu0 %vm450_vm0, %v449_v3  ;;  %391 = vmatpush3.bf16.msra.mxu0 %v57_v42 }
  0x16   :  { %392 = vmatprep.subr.bf16.mxu0 %v449_v3 }
  0x19   :  { %393 = vmatpush3.bf16.msra.mxu0 %v56_v44 }
  0x1a   :  { %394 = vmatprep.subr.bf16.mxu0 %v449_v3 }
  0x1d   :  { %395 = vmatpush3.bf16.msra.mxu0 %v55_v47 }
  0x1e   :  { %396 = vmatprep.subr.bf16.mxu0 %v449_v3 }
  0x21   :  { %397 = vmatpush3.bf16.msra.mxu0 %v54_v50 }
  0x24   :  { %399 = vmatmul.mubr.msk.bf16.vlgmr.msra.gmra.mxu0 %vm58_vm1, %v21_v27 }
  0xd3   :  { %v137_v28 = vpop.f32.mrf.mxu1 }
  0xd4   :  { %v96_v29 = vpop.f32.mrf.mxu0 }
  0xd5   :  { %v388_v30 = vpop.f32.mrf.mxu1 }
  0xd6   :  { %v376_v31 = vpop.f32.mrf.mxu0 }
  0xd7   :  { %v140_v32 = vpop.f32.mrf.mxu1 }
  0xd8   :  { %v186_v33 = vpack.c.bf16 %v140_v32, %v137_v28  ;;  %v99_v34 = vpop.f32.mrf.mxu0 }
  0xd9   :  { %v389_v35 = vpop.f32.mrf.mxu1  ;;  %v185_v38 = vpack.c.bf16 %v99_v34, %v96_v29 }
  0xda   :  { %v192_v36 = vsel %vm187_vm2, %v186_v33, 0  ;;  %v377_v37 = vpop.f32.mrf.mxu0 }
  0xdb   :  { %403 = vmatpush3.bf16.xpose.msra.mxu1 %v192_v36 }
  0xdc   :  { %408 = vmatprep.subr.bf16.mxu1 %v449_v3 }
  0xe2   :  { %405 = vmatmul.mubr.msk.bf16.vlgmr.msra.gmra.mxu1 %vm187_vm2, %v185_v38 }
  0xe3   :  { %410 = vmatprep.mubr.msk.bf16.mxu1 %vm450_vm0, %v449_v3 }
  0xe4   :  { %v178_v17 = vpop.f32.mrf.mxu0 }
  0xe6   :  { %v400_v18 = vpop.f32.mrf.mxu0 }
  0xe8   :  { %v181_v19 = vpop.f32.mrf.mxu0 }
  0xe9   :  { %v279_v21 = vpack.c.bf16 %v181_v19, %v178_v17 }
  0xea   :  { %v401_v20 = vpop.f32.mrf.mxu0 }
  0xeb   :  { %409 = vmatpush3.bf16.msra.mxu1 %v279_v21 }
 0x1a2   :  { %v228_v61 = vpop.f32.mrf.mxu1 }
 0x1a3   :  { %v235_v62 = vmul.f32 0.125, %v228_v61 }
 0x1a4   :  { %v406_v63 = vpop.f32.mrf.mxu1 }
 0x1a5   :  { %v254_v0 = vsel %vm252_vm5, %v235_v62, -inf }
 0x1a6   :  { %v231_v1 = vpop.f32.mrf.mxu1  ;;  %v256_v2 = vsel %vm187_vm2, %v254_v0, -inf }
 0x1a7   :  { %v236_v3 = vmul.f32 0.125, %v231_v1  ;;  %257 = vmax.xlane.f32.xlu0 %v256_v2 }
 0x1a8   :  { %v407_v4 = vpop.f32.mrf.mxu1 }
 0x1a9   :  { %v255_v5 = vsel %vm253_vm8, %v236_v3, -inf }
 0x1aa   :  { %v259_v6 = vsel %vm187_vm2, %v255_v5, -inf }
 0x1ab   :  { %260 = vmax.xlane.f32.xlu0 %v259_v6 }
 0x230   :  { %v258_v7 = vpop.xlane.xlu0 %257 }
 0x231   :  { %v262_v8 = vsub.f32 %v254_v0, %v258_v7 }
 0x233   :  { %v264_v9 = vmul.f32 1.442695, %v262_v8 }
 0x234   :  { %v261_v10 = vpop.xlane.xlu0 %260 }
 0x235   :  { %419 = vpow2.f32 %v264_v9  ;;  %v263_v11 = vsub.f32 %v255_v5, %v261_v10 }
 0x237   :  { %v266_v12 = vmul.f32 1.442695, %v263_v11 }
 0x239   :  { %421 = vpow2.f32 %v266_v12 }
 0x242   :  { %v420_v13 = vpop.eup %419 }
 0x243   :  { %v268_v14 = vsel %vm187_vm2, %v420_v13, 0.0 }
 0x244   :  { %269 = vadd.xlane.f32.xlu1 %v268_v14 }
 0x246   :  { %v422_v15 = vpop.eup %421 }
 0x247   :  { %v271_v16 = vsel %vm187_vm2, %v422_v15, 0.0 }
 0x248   :  { %272 = vadd.xlane.f32.xlu1 %v271_v16 }
 0x2cd   :  { %v270_v22 = vpop.xlane.xlu1 %269 }
 0x2ce   :  { %423 = vrcp.f32 %v270_v22 }
 0x2d1   :  { %v273_v23 = vpop.xlane.xlu1 %272 }
 0x2d2   :  { %425 = vrcp.f32 %v273_v23 }
 0x2db   :  { %v424_v24 = vpop.eup %423 }
 0x2dc   :  { %v275_v27 = vmul.f32 %v424_v24, %v420_v13 }
 0x2df   :  { %v426_v25 = vpop.eup %425 }
 0x2e0   :  { %v277_v26 = vmul.f32 %v426_v25, %v422_v15 }
 0x2e2   :  { %v278_v28 = vpack.c.bf16 %v277_v26, %v275_v27 }
 0x2e4   :  { %411 = vmatmul.mubr.msk.bf16.vlgmr.msra.gmra.mxu1 %vm187_vm2, %v278_v28 }
 0x3a4   :  { %v317_v29 = vpop.f32.mrf.mxu1 }
 0x3a5   :  { %324 = vst.msk [vmem:[#allocation2] sm:$0xff] %vm187_vm2, %v317_v29 }
 0x3a6   :  { %v412_v30 = vpop.f32.mrf.mxu1 }
 0x3a8   :  { %v320_v31 = vpop.f32.mrf.mxu1 }
 0x3a9   :  { %325 = vst.msk [vmem:[#allocation2 + $0x8] sm:$0xff] %vm187_vm2, %v320_v31 }
 0x3aa   :  { %v413_v32 = vpop.f32.mrf.mxu1 }
 0x3ab   :  { %438 = shalt.err (!%p435_p4)
}
 0x3ac   :  { %s452_s14 = smov 128   ;;  %s453_s15 = smov 8  }
 0x3ad   :  { %337 = dma.vmem_to_hbm [thread:$0]  %s332_s12, 256, %s600_s4, [#allocation3], %s452_s14, %s452_s14, %s453_s15  }
 0x3ae   :  { %447 = dma.done.wait [#allocation3], 256  }
 0x3af   :  { %448 = vsyncadd [#allocation3], 4294967040 }
 0x3b0   :  { %341 = vsyncpa [#allocation3], 1 }

</bundles_post_ra>
